<compile_context>
chip_gen: v7x
topology: tpu7x:2x2x1
jax: 0.10.0
libtpu: 0.0.40
codegen_flags: <defaults>
</compile_context>

<pallas_src>
import functools

import numpy as np
import jax
import jax.numpy as jnp
from jax.experimental import pallas as pl
from jax.experimental.pallas import tpu as pltpu

NUM_CLASSES = 3
GAMMA = 2.0
STABILITY_FACTOR = 0.5

LANES = 128           # vreg lane width; feature rows are 128 wide
MAX_TILE_ROWS = 4096  # rows per streamed tile: 4096*128*4B = 2 MiB / input (f32)


def _round_up(x, m):
    return ((x + m - 1) // m) * m


# ----------------------------------------------------------------------------
# Host-side stateful trackers (mirror the PyTorch helper classes exactly).
# ----------------------------------------------------------------------------
class MovingAverage:
    def __init__(self, window_size=5):
        self.window_size = window_size
        self.values = []

    def update(self, new_value):
        self.values.append(new_value)
        if len(self.values) > self.window_size:
            self.values.pop(0)
        return self.average()

    def average(self):
        return sum(self.values) / len(self.values)


class StabilityTracker:
    def __init__(self, window_size=10):
        self.window_size = window_size
        self.scores = []

    def update(self, new_score):
        self.scores.append(new_score)
        if len(self.scores) > self.window_size:
            self.scores.pop(0)
        return self.get_stability()

    def get_stability(self):
        if len(self.scores) < 2:
            return 1.0
        # torch.var defaults to unbiased (ddof=1)
        return 1.0 / (1.0 + float(np.var(np.asarray(self.scores, dtype=np.float64), ddof=1)))


def _cosine_progress(l):
    return float(np.clip(0.5 * (1.0 + np.cos((l - 1.0) * np.pi)), 0.0, 1.0))


def compute_class_weights(val_averages, stability_tracker,
                          stability_factor=STABILITY_FACTOR):
    """Scalar class-weight arithmetic from AdaptivePCFLLoss.forward (host side)."""
    val_scores = np.array([ma.average() for ma in val_averages], dtype=np.float64)
    stability = float(stability_tracker.get_stability())

    w = []
    d = 0.0
    for vs in val_scores:
        w.append(_cosine_progress(vs - d))
        d = float(vs)

    f1_avg = float(np.mean(val_scores))
    for i in range(3):
        w[i] *= max(1.0, f1_avg / (val_scores[i] + 1e-08))

    stability_adjustment = float(np.clip(1.0 + (stability - 1.0) * stability_factor, 0.1, 10.0))
    for i in range(3):
        w[i] = 1.0 + (w[i] - 1.0) * stability_adjustment + 1e-08

    total_weight = sum(w)
    w = [wi / total_weight for wi in w]

    min_weight = 0.05
    w = [max(wi, min_weight) for wi in w]
    s = sum(w)
    w = [wi / s for wi in w]
    return np.array(w, dtype=np.float32)


# ----------------------------------------------------------------------------
# Pallas kernel: streamed per-sample MSE reduction + focal finalize.
# ----------------------------------------------------------------------------
def adaptive_pcfl_kernel(w_ref, pred_ref, true_ref, out_ref, samp_acc,
                         *, gamma, inv_f, inv_b):
    # w_ref    : [B, 1]            per-sample class weight (resident, DMA'd once)
    # pred_ref : [1, TILE_R, 128]  current feature tile of sample b (native dtype)
    # true_ref : [1, TILE_R, 128]
    # out_ref  : [1, 1]            final scalar weighted loss (accumulator)
    # samp_acc : [1, 1] f32        per-sample sum of squared error
    b = pl.program_id(0)            # sample index
    t = pl.program_id(1)            # feature-tile index (reduction axis, last)
    nt = pl.num_programs(1)

    @pl.when(jnp.logical_and(b == 0, t == 0))
    def _():
        out_ref[...] = jnp.zeros_like(out_ref)

    @pl.when(t == 0)
    def _():
        samp_acc[...] = jnp.zeros_like(samp_acc)

    # Streamed partial reduction; upcast to f32 in-kernel (v5e VPU has no bf16).
    d = pred_ref[...].astype(jnp.float32) - true_ref[...].astype(jnp.float32)
    samp_acc[...] += jnp.sum(d * d).reshape(1, 1)

    # Per-sample finalize on the last feature tile.
    @pl.when(t == nt - 1)
    def _():
        base = samp_acc[...] * inv_f                    # per-sample MSE   [1,1]
        p_t = jnp.clip(base, 1e-08, 100.0)
        log1p_pt = jnp.log1p(p_t)
        if gamma == 2.0:
            mod = jnp.square(log1p_pt)                  # avoid pow -> exp(g*log(x))
        else:
            mod = log1p_pt ** gamma
        # Select this sample's weight from the resident [B,1] block without
        # dynamic indexing (iota + mask + reduce); runs once per sample.
        w_all = w_ref[...]
        row = jax.lax.broadcasted_iota(jnp.int32, w_all.shape, 0)
        w_b = jnp.sum(jnp.where(row == b, w_all, 0.0))
        out_ref[...] += (w_b * mod * base) * inv_b      # mean over the batch


def adaptive_pcfl_loss(y_pred, y_true, labels, class_weights, *, gamma=GAMMA):
    """JAX wrapper: layout plumbing + pallas_call on the hot path."""
    B = y_pred.shape[0]
    F = int(np.prod(y_pred.shape[1:]))

    # Per-sample weight.  Matches the reference module exactly: the 1e-8
    # epsilon is added once per class inside the loop -> w[label] + 3e-8.
    onehot = jax.nn.one_hot(labels, NUM_CLASSES, dtype=jnp.float32)          # [B, 3]
    w_vec = jnp.sum(class_weights[None, :].astype(jnp.float32) * onehot + 1e-08,
                    axis=1).reshape(B, 1)                                    # [B, 1]

    # Reshape features to [B, R_pad, 128]: rows on the sublane axis.  Pad with
    # zeros on BOTH pred and true (zero diff -> no contribution to the sum of
    # squares) and divide by the true F in the kernel.
    R = -(-F // LANES)
    tile_r = min(_round_up(R, 8), MAX_TILE_ROWS)     # multiple of 8 sublanes
    r_pad = _round_up(R, tile_r)
    f_pad = r_pad * LANES
    nt = r_pad // tile_r

    pred = y_pred.reshape(B, F)      # native dtype; upcast happens in-kernel
    true = y_true.reshape(B, F)
    if f_pad != F:
        pad = ((0, 0), (0, f_pad - F))
        pred = jnp.pad(pred, pad)
        true = jnp.pad(true, pad)
    pred3d = pred.reshape(B, r_pad, LANES)
    true3d = true.reshape(B, r_pad, LANES)

    kernel = functools.partial(adaptive_pcfl_kernel, gamma=float(gamma),
                               inv_f=1.0 / float(F), inv_b=1.0 / float(B))

    itemsize = jnp.dtype(y_pred.dtype).itemsize
    cost = pl.CostEstimate(
        flops=3 * B * f_pad,                 # sub, mul, add per element
        transcendentals=2 * B,               # log1p (+pow) per sample
        bytes_accessed=2 * B * f_pad * itemsize + 4 * B + 4,
    )

    out = pl.pallas_call(
        kernel,
        out_shape=jax.ShapeDtypeStruct((1, 1), jnp.float32),
        grid_spec=pltpu.PrefetchScalarGridSpec(
            num_scalar_prefetch=0,
            grid=(B, nt),                    # reduction (feature) axis last
            in_specs=[
                # weights: full block, constant index -> fetched once, resident
                pl.BlockSpec((B, 1), lambda b, t: (0, 0)),
                pl.BlockSpec((1, tile_r, LANES), lambda b, t: (b, t, 0)),
                pl.BlockSpec((1, tile_r, LANES), lambda b, t: (b, t, 0)),
            ],
            out_specs=pl.BlockSpec((1, 1), lambda b, t: (0, 0)),
            scratch_shapes=[pltpu.VMEM((1, 1), jnp.float32)],
        ),
        compiler_params=pltpu.CompilerParams(
            # Output is a scalar accumulator over both axes -> both "arbitrary".
            dimension_semantics=("arbitrary", "arbitrary"),
            # 2 inputs x 2 buffers x 2 MiB (f32) = 8 MiB steady state; 32 MiB
            # leaves headroom and fits v5e/v6e/v7x scoped-VMEM budgets.
            vmem_limit_bytes=32 * 1024 * 1024,
        ),
        cost_estimate=cost,
    )(w_vec, pred3d, true3d)
    return out[0, 0]


# ----------------------------------------------------------------------------
# Pure-JAX reference (for the built-in sanity check).
# ----------------------------------------------------------------------------
def adaptive_pcfl_loss_ref(y_pred, y_true, labels, class_weights, *, gamma=GAMMA):
    B = y_pred.shape[0]
    pred2d = y_pred.reshape(B, -1).astype(jnp.float32)
    true2d = y_true.reshape(B, -1).astype(jnp.float32)
    onehot = jax.nn.one_hot(labels, NUM_CLASSES, dtype=jnp.float32)
    w_vec = jnp.sum(class_weights[None, :].astype(jnp.float32) * onehot + 1e-08, axis=1)
    base = jnp.mean((pred2d - true2d) ** 2, axis=-1)
    p_t = jnp.clip(base, 1e-08, 100.0)
    mod = jnp.log1p(p_t) ** gamma
    return jnp.mean(w_vec * mod * base)


# ----------------------------------------------------------------------------
# Deterministic example run.
# ----------------------------------------------------------------------------
if __name__ == "__main__":
    # Deterministically seed the moving-average / stability trackers
    # (the module's __init__ starts them empty; forward requires history).
    val_averages = [MovingAverage() for _ in range(NUM_CLASSES)]
    stability_tracker = StabilityTracker()
    seed_vals = [
        [0.60, 0.62, 0.65],   # class 0 validation scores
        [0.40, 0.45, 0.50],   # class 1
        [0.70, 0.68, 0.72],   # class 2
    ]
    for step in range(3):
        smoothed = [val_averages[c].update(seed_vals[c][step]) for c in range(NUM_CLASSES)]
        stability_tracker.update(sum(smoothed) / len(smoothed))

    class_w = jnp.asarray(compute_class_weights(val_averages, stability_tracker))

    key = jax.random.PRNGKey(0)
    k1, k2 = jax.random.split(key)
    # PyTorch NCHW: [batch=2, channels=4, H=16, W=16]
    y_pred = jax.random.normal(k1, (2, 4, 16, 16), dtype=jnp.float32)
    y_true = jax.random.normal(k2, (2, 4, 16, 16), dtype=jnp.float32)
    labels = jnp.array([0, 2], dtype=jnp.int32)

    loss = adaptive_pcfl_loss(y_pred, y_true, labels, class_w)
    loss = jax.block_until_ready(loss)

    ref = jax.block_until_ready(
        adaptive_pcfl_loss_ref(y_pred, y_true, labels, class_w))
    np.testing.assert_allclose(np.asarray(loss), np.asarray(ref),
                               rtol=1e-4, atol=1e-6)
    print("KERNEL_OK")
</pallas_src>

<mosaic_0001>
module attributes {stable_mosaic.version = 11 : i64} {
  func.func @adaptive_pcfl_kernel(%arg0: i32, %arg1: i32, %arg2: memref<2x1xf32, #tpu.memory_space<vmem>>, %arg3: memref<1x8x128xf32, #tpu.memory_space<vmem>>, %arg4: memref<1x8x128xf32, #tpu.memory_space<vmem>>, %arg5: memref<1x1xf32, #tpu.memory_space<vmem>>, %arg6: memref<1x1xf32, #tpu.memory_space<vmem>>) attributes {dimension_semantics = [#tpu.dimension_semantics<arbitrary>, #tpu.dimension_semantics<arbitrary>], iteration_bounds = array<i64: 2, 1>, scalar_prefetch = 0 : i64, scratch_operands = 1 : i64, tpu.core_type = #tpu.core_type<tc>, window_params = [{pipeline_mode = #tpu.pipeline_mode<synchronous>, transform_indices = @transform_0, window_bounds = array<i64: 2, 1>}, {transform_indices = @transform_1, window_bounds = array<i64: 1, 8, 128>}, {transform_indices = @transform_2, window_bounds = array<i64: 1, 8, 128>}, {pipeline_mode = #tpu.pipeline_mode<synchronous>, transform_indices = @transform_3, window_bounds = array<i64: 1, 1>}]} {
    %c0_i32 = arith.constant 0 : i32
    %0 = arith.cmpi eq, %arg0, %c0_i32 : i32
    %c0_i32_0 = arith.constant 0 : i32
    %1 = arith.cmpi eq, %arg1, %c0_i32_0 : i32
    %2 = arith.andi %0, %1 : i1
    %3 = arith.extui %2 : i1 to i32
    %c0_i32_1 = arith.constant 0 : i32
    %4 = arith.cmpi ne, %3, %c0_i32_1 : i32
    scf.if %4 {
      %cst_15 = arith.constant 0.000000e+00 : f32
      %23 = vector.broadcast %cst_15 : f32 to vector<1x1xf32>
      %c0_16 = arith.constant 0 : index
      %c0_17 = arith.constant 0 : index
      %24 = vector.load %arg5[%c0_16, %c0_17] : memref<1x1xf32, #tpu.memory_space<vmem>>, vector<1x1xf32>
      tpu.vector_store %arg5[%c0_16, %c0_17], %23 {strides = array<i32>} : memref<1x1xf32, #tpu.memory_space<vmem>>, vector<1x1xf32>,
    } else {
    }
    %c0_i32_2 = arith.constant 0 : i32
    %5 = arith.cmpi eq, %arg1, %c0_i32_2 : i32
    %6 = arith.extui %5 : i1 to i32
    %c0_i32_3 = arith.constant 0 : i32
    %7 = arith.cmpi ne, %6, %c0_i32_3 : i32
    scf.if %7 {
      %cst_15 = arith.constant 0.000000e+00 : f32
      %23 = vector.broadcast %cst_15 : f32 to vector<1x1xf32>
      %c0_16 = arith.constant 0 : index
      %c0_17 = arith.constant 0 : index
      %24 = vector.load %arg6[%c0_16, %c0_17] : memref<1x1xf32, #tpu.memory_space<vmem>>, vector<1x1xf32>
      tpu.vector_store %arg6[%c0_16, %c0_17], %23 {strides = array<i32>} : memref<1x1xf32, #tpu.memory_space<vmem>>, vector<1x1xf32>,
    } else {
    }
    %c0 = arith.constant 0 : index
    %c0_4 = arith.constant 0 : index
    %c0_5 = arith.constant 0 : index
    %8 = vector.load %arg3[%c0, %c0_4, %c0_5] : memref<1x8x128xf32, #tpu.memory_space<vmem>>, vector<1x8x128xf32>
    %c0_6 = arith.constant 0 : index
    %c0_7 = arith.constant 0 : index
    %c0_8 = arith.constant 0 : index
    %9 = vector.load %arg4[%c0_6, %c0_7, %c0_8] : memref<1x8x128xf32, #tpu.memory_space<vmem>>, vector<1x8x128xf32>
    %10 = arith.subf %8, %9 : vector<1x8x128xf32>
    %c0_9 = arith.constant 0 : index
    %c0_10 = arith.constant 0 : index
    %11 = vector.load %arg6[%c0_9, %c0_10] : memref<1x1xf32, #tpu.memory_space<vmem>>, vector<1x1xf32>
    %12 = arith.mulf %10, %10 : vector<1x8x128xf32>
    %13 = vector.shape_cast %12 : vector<1x8x128xf32> to vector<1x1x8x128xf32>
    %cst = arith.constant dense<0.000000e+00> : vector<1xf32>
    %14 = vector.multi_reduction <add>, %13, %cst [1, 2, 3] : vector<1x1x8x128xf32> to vector<1xf32>
    %15 = vector.shape_cast %14 : vector<1xf32> to vector<1x1x1x1xf32>
    %16 = vector.extract %15[0, 0, 0, 0] : f32 from vector<1x1x1x1xf32>
    %17 = vector.broadcast %16 : f32 to vector<1x1xf32>
    %18 = arith.addf %11, %17 : vector<1x1xf32>
    %c0_11 = arith.constant 0 : index
    %c0_12 = arith.constant 0 : index
    %19 = vector.load %arg6[%c0_11, %c0_12] : memref<1x1xf32, #tpu.memory_space<vmem>>, vector<1x1xf32>
    tpu.vector_store %arg6[%c0_11, %c0_12], %18 {strides = array<i32>} : memref<1x1xf32, #tpu.memory_space<vmem>>, vector<1x1xf32>,
    %c0_i32_13 = arith.constant 0 : i32
    %20 = arith.cmpi eq, %arg1, %c0_i32_13 : i32
    %21 = arith.extui %20 : i1 to i32
    %c0_i32_14 = arith.constant 0 : i32
    %22 = arith.cmpi ne, %21, %c0_i32_14 : i32
    scf.if %22 {
      %c0_15 = arith.constant 0 : index
      %c0_16 = arith.constant 0 : index
      %23 = vector.load %arg6[%c0_15, %c0_16] : memref<1x1xf32, #tpu.memory_space<vmem>>, vector<1x1xf32>
      %cst_17 = arith.constant 9.765625E-4 : f32
      %24 = vector.broadcast %cst_17 : f32 to vector<1x1xf32>
      %25 = arith.mulf %23, %24 : vector<1x1xf32>
      %cst_18 = arith.constant 9.99999993E-9 : f32
      %cst_19 = arith.constant 1.000000e+02 : f32
      %26 = vector.broadcast %cst_18 : f32 to vector<1x1xf32>
      %27 = arith.maximumf %26, %25 : vector<1x1xf32>
      %28 = vector.broadcast %cst_19 : f32 to vector<1x1xf32>
      %29 = arith.minimumf %28, %27 : vector<1x1xf32>
      %30 = math.log1p %29 : vector<1x1xf32>
      %31 = arith.mulf %30, %30 : vector<1x1xf32>
      %c0_20 = arith.constant 0 : index
      %c0_21 = arith.constant 0 : index
      %32 = vector.load %arg2[%c0_20, %c0_21] : memref<2x1xf32, #tpu.memory_space<vmem>>, vector<2x1xf32>
      %33 = tpu.iota {dimensions = array<i32: 0>} : vector<2x1xi32>
      %34 = vector.broadcast %arg0 : i32 to vector<2x1xi32>
      %35 = arith.cmpi eq, %33, %34 : vector<2x1xi32>
      %cst_22 = arith.constant 0.000000e+00 : f32
      %36 = vector.broadcast %cst_22 : f32 to vector<2x1xf32>
      %37 = arith.select %35, %32, %36 : vector<2x1xi1>, vector<2x1xf32>
      %38 = vector.shape_cast %37 : vector<2x1xf32> to vector<1x2x1xf32>
      %cst_23 = arith.constant dense<0.000000e+00> : vector<1xf32>
      %39 = vector.multi_reduction <add>, %38, %cst_23 [1, 2] : vector<1x2x1xf32> to vector<1xf32>
      %40 = vector.shape_cast %39 : vector<1xf32> to vector<1x1x1xf32>
      %41 = vector.extract %40[0, 0, 0] : f32 from vector<1x1x1xf32>
      %c0_24 = arith.constant 0 : index
      %c0_25 = arith.constant 0 : index
      %42 = vector.load %arg5[%c0_24, %c0_25] : memref<1x1xf32, #tpu.memory_space<vmem>>, vector<1x1xf32>
      %43 = vector.broadcast %41 : f32 to vector<1x1xf32>
      %44 = arith.mulf %43, %31 : vector<1x1xf32>
      %45 = arith.mulf %44, %25 : vector<1x1xf32>
      %cst_26 = arith.constant 5.000000e-01 : f32
      %46 = vector.broadcast %cst_26 : f32 to vector<1x1xf32>
      %47 = arith.mulf %45, %46 : vector<1x1xf32>
      %48 = arith.addf %42, %47 : vector<1x1xf32>
      %c0_27 = arith.constant 0 : index
      %c0_28 = arith.constant 0 : index
      %49 = vector.load %arg5[%c0_27, %c0_28] : memref<1x1xf32, #tpu.memory_space<vmem>>, vector<1x1xf32>
      tpu.vector_store %arg5[%c0_27, %c0_28], %48 {strides = array<i32>} : memref<1x1xf32, #tpu.memory_space<vmem>>, vector<1x1xf32>,
    } else {
    }
    return
  }
  func.func @transform_0(%arg0: i32, %arg1: i32) -> (i32, i32) {
    %c0_i32 = arith.constant 0 : i32
    %c0_i32_0 = arith.constant 0 : i32
    %c0_i32_1 = arith.constant 0 : i32
    return %c0_i32, %c0_i32_0 : i32, i32
  }
  func.func @transform_1(%arg0: i32, %arg1: i32) -> (i32, i32, i32) {
    %c0_i32 = arith.constant 0 : i32
    %c0_i32_0 = arith.constant 0 : i32
    return %arg0, %arg1, %c0_i32 : i32, i32, i32
  }
  func.func @transform_2(%arg0: i32, %arg1: i32) -> (i32, i32, i32) {
    %c0_i32 = arith.constant 0 : i32
    %c0_i32_0 = arith.constant 0 : i32
    return %arg0, %arg1, %c0_i32 : i32, i32, i32
  }
  func.func @transform_3(%arg0: i32, %arg1: i32) -> (i32, i32) {
    %c0_i32 = arith.constant 0 : i32
    %c0_i32_0 = arith.constant 0 : i32
    %c0_i32_1 = arith.constant 0 : i32
    return %c0_i32, %c0_i32_0 : i32, i32
  }
}

</mosaic_0001>

<bundles_post_ra>
// kernel: tpu_custom_call.1
= control target key start
LH: loop header
LB: loop body
LE: loop exit
PB: predicated region body
PF: predicated region fallthrough
CT: control target
= control target key end

     0   :  { %8 = vsyncpa [#allocation4], 0  ;;  %s859_s0 = inlined_call_operand.vmem [shape: f32[2,1], index: 0, kind: input, shape index: {}]   ;;  %s860_s1 = inlined_call_operand.hbm [shape: f32[2,8,128], index: 1, kind: input, shape index: {}]   ;;  %s861_s2 = inlined_call_operand.hbm [shape: f32[2,8,128], index: 2, kind: input, shape index: {}]   ;;  %s862_s3 = inlined_call_operand.hbm [shape: f32[1,1], index: 3, kind: output, shape index: {}]  }
   0x1   :  { %10 = vsyncpa [#allocation4 + $0x1], 0 }
   0x2   :  { %11 = vsyncpa [#allocation7], 0 }
   0x3   :  { %13 = vsyncpa [#allocation7 + $0x1], 0 }
   0x4   :  { %14 = vsyncpa [#allocation5], 0  ;;  %s654_s12 = smov 0   ;;  %s656_s13 = smov 0  }
   0x5   :  { %s658_s14 = smov 0   ;;  %s660_s15 = smov 0  }
   0x6   :  { %s662_s16 = smov 0   ;;  %s664_s17 = smov 0  }
   0x7 LB: > { %s392_s18 = sadd.s32 4294967295, %s627_s17   ;;  %s32_s19 = sadd.s32 1, %s623_s16  ;;  %s627_s17 = sphi %s664_s17, %s20_s17   ;;  %s623_s16 = sphi %s662_s16, %s877_s16   ;;  %s619_s15 = sphi %s660_s15, %s876_s15   ;;  %s615_s14 = sphi %s658_s14, %s875_s14   ;;  %s611_s13 = sphi %s656_s13, %s874_s13   ;;  %s607_s12 = sphi %s654_s12, %s873_s12  }
   0x8   : > { %p34_p0 = scmp.ge.s32.totalorder %s32_s19, 2  ;;  %s62_s20 = sadd.s32 1, %s615_s14 }
   0x9   : > { %p69_p1 = scmp.ne.s32.totalorder %s615_s14, %s611_s13  ;;  %p70_p2 = scmp.eq.s32.totalorder %s627_s17, 0 }
   0xa   : > { %s879_s19 = smov (%p34_p0, %s32_s19), 0  ;;  %p75_p4 = scmp.ne.s32.totalorder %s611_s13, %s607_s12 }
   0xb   : > { %p690_p3 = por %p70_p2, %p69_p1  ;;  %s57_s22 = ssub.s32 %s623_s16, %s879_s19 }
   0xc   : > { %p76_p5 = scmp.eq.s32.totalorder %s392_s18, 0  ;;  %p60_p6 = scmp.eq.s32.totalorder %s57_s22, 0 }
   0xd   : > { %p427_p8 = scmp.lt.s32.totalorder %s627_s17, 2  ;;  %s708_s25 = sand.u32 1, %s615_s14  }
   0xe   : > { %p699_p7 = por %p76_p5, %p75_p4  ;;  %s396_s26 = sshll.u32 %s623_s16, 7 }
   0xf   : > { %s705_s24 = scalar_select %p60_p6, %s615_s14, %s62_s20  }
  0x10   : > { %s865_s23 = scalar_select %p699_p7, 1, 0 }
  0x11   : > { %s395_s27 = sshll.u32 %s708_s25, 3  ;;  %s717_s30 = scalar_lea.hbm %s860_s1, %s396_s26 }
  0x12   : > { %s155_s4 = scalar_lea.vmem [#allocation3], %s395_s27  ;;  %p723_p9 = pnand %p427_p8, %p690_p3 }
  0x13   : > { %s163_s5 = sshll.u32 %s155_s4, 4  ;;  %s152_s7 = scalar_lea.sflag [#allocation4], %s708_s25  ;;  %s727_s5 = int_to_ptr.vmem [resolvable:$true] %s163_s5 }
  0x14   : > { %s483_s8 = scalar_lea.hbm %s717_s30, 128  ;;  %p485_p13 = pneg %p723_p9 }
  0x15   : > { %p484_p12 = scmp.ne.s32.totalorder %s717_s30, %s483_s8  ;;  %s488_s11 = scalar_lea.hbm %s860_s1, 256 }
  0x16   : > { %p489_p2 = scmp.lt.u32.totalorder %s717_s30, %s860_s1  ;;  %p490_p3 = scmp.lt.u32.totalorder %s488_s11, %s483_s8 }
  0x17   : > { %p486_p0 = pnand %p485_p13, %p484_p12  ;;  %p492_p5 = scmp.lt.u32.totalorder %s483_s8, %s717_s30 }
  0x18   : > { %p491_p4 = por %p490_p3, %p489_p2 }
  0x19   : > { %p487_p1 = pneg %p486_p0 }
  0x1a   : > { %p493_p6 = por %p492_p5, %p491_p4 }
  0x1c   : > { %p494_p8 = pnand %p493_p6, %p487_p1 }
  0x1e   : > { %497 = shalt.err (!%p494_p8)
}
  0x1f   : > { %s498_s21 = scalar_lea.vmem %s727_s5, 128  ;;  %s629_s22 = smov [#allocation3]  }
  0x20   : > { %p499_p12 = scmp.ne.s32.totalorder %s727_s5, %s498_s21  ;;  %s503_s28 = sshll.u32 %s629_s22, 4  ;;  %s504_s28 = int_to_ptr.vmem [resolvable:$false] %s503_s28 }
  0x21   : > { %s505_s29 = scalar_lea.vmem %s504_s28, 256  ;;  %p506_p11 = scmp.lt.s32.totalorder %s727_s5, %s504_s28 }
  0x22   : > { %p501_p0 = pnand %p499_p12, %p485_p13  ;;  %p507_p2 = scmp.lt.s32.totalorder %s505_s29, %s498_s21 }
  0x24   : > { %p502_p10 = pneg %p501_p0  ;;  %p508_p3 = por %p507_p2, %p506_p11 }
  0x26   : > { %p509_p4 = pnand %p508_p3, %p502_p10 }
  0x28   : > { %512 = shalt.err (!%p509_p4)
}
  0x29   : > { %423 = dma.hbm_to_vmem [thread:$0]  (!%p723_p9), %s717_s30, 128, %s727_s5, %s152_s7  }
  0x2a   : > { %p867_p1 = scmp.lt.s32.totalorder %s627_s17, 3  ;;  %p868_p5 = scmp.ge.s32.totalorder %s627_s17, 1 }
  0x2b   : > { %s770_s10 = scalar_lea.hbm %s861_s2, %s396_s26  ;;  %s174_s11 = scalar_lea.vmem [#allocation6], %s395_s27 }
  0x2c   : > { %p761_p6 = pnand %p868_p5, %p867_p1  ;;  %s182_s12 = sshll.u32 %s174_s11, 4  ;;  %s183_s12 = int_to_ptr.vmem [resolvable:$true] %s182_s12 }
  0x2d   : > { %s171_s30 = scalar_lea.sflag [#allocation7], %s708_s25  ;;  %s513_s5 = scalar_lea.hbm %s770_s10, 128 }
  0x2e   : > { %s869_s4 = scalar_select %p761_p6, 1, 0 }
  0x2f   : > { %p514_p10 = scmp.ne.s32.totalorder %s770_s10, %s513_s5  ;;  %s518_s26 = scalar_lea.hbm %s861_s2, 256 }
  0x30   : > { %p519_p12 = scmp.lt.u32.totalorder %s770_s10, %s861_s2  ;;  %p520_p0 = scmp.lt.u32.totalorder %s518_s26, %s513_s5 }
  0x31   : > { %p516_p11 = pnand %p514_p10, %p485_p13  ;;  %p522_p3 = scmp.lt.u32.totalorder %s513_s5, %s770_s10 }
  0x32   : > { %p521_p2 = por %p520_p0, %p519_p12 }
  0x33   : > { %p517_p8 = pneg %p516_p11 }
  0x34   : > { %p523_p4 = por %p522_p3, %p521_p2 }
  0x36   : > { %p524_p1 = pnand %p523_p4, %p517_p8 }
  0x38   : > { %527 = shalt.err (!%p524_p1)
}
  0x39   : > { %s528_s25 = scalar_lea.vmem %s183_s12, 128  ;;  %s630_s27 = smov [#allocation6]  }
  0x3a   : > { %p529_p5 = scmp.ne.s32.totalorder %s183_s12, %s528_s25  ;;  %s533_s28 = sshll.u32 %s630_s27, 4  ;;  %s534_s28 = int_to_ptr.vmem [resolvable:$false] %s533_s28 }
  0x3b   : > { %s535_s29 = scalar_lea.vmem %s534_s28, 256  ;;  %p536_p7 = scmp.lt.s32.totalorder %s183_s12, %s534_s28 }
  0x3c   : > { %p531_p10 = pnand %p529_p5, %p485_p13  ;;  %p537_p6 = scmp.lt.s32.totalorder %s535_s29, %s528_s25 }
  0x3e   : > { %p532_p11 = pneg %p531_p10  ;;  %p538_p0 = por %p537_p6, %p536_p7 }
  0x40   : > { %p539_p12 = pnand %p538_p0, %p532_p11 }
  0x42   : > { %542 = shalt.err (!%p539_p12)
}
  0x43   : > { %426 = dma.hbm_to_vmem [thread:$0]  (!%p723_p9), %s770_s10, 128, %s183_s12, %s171_s30  }
  0x44   : > { %p870_p8 = scmp.ne.s32.totalorder %s869_s4, 0 }
  0x45   : > { %s193_s8 = sand.u32 (!%p870_p8), 1, %s611_s13   ;;  %p871_p13 = scmp.ne.s32.totalorder (!%p870_p8), %s865_s23, 0 }
  0x46   : > { %191 = sbr.rel (%p870_p8) target bundleno = 356 (0x164), region = 32  ;;  %s400_s9 = sshll.u32 (!%p870_p8), %s193_s8, 3 }
  0x47   : > { %s194_s11 = scalar_lea.sflag (!%p870_p8), [#allocation4], %s193_s8  ;;  %s197_s5 = scalar_lea.vmem (!%p870_p8), [#allocation3], %s400_s9 }
  0x4d   : > { %594 = dma.done.wait (%p871_p13), %s194_s11, 128  }
  0x4e   : > { %596 = vsyncadd (%p871_p13), %s194_s11, 4294967168  ;;  %s203_s7 = scalar_lea.sflag [#allocation7], %s193_s8  ;;  %s206_s20 = scalar_lea.vmem [#allocation6], %s400_s9 }
  0x4f   : > { %598 = dma.done.wait (%p871_p13), %s203_s7, 128  }
  0x50   : > { %600 = vsyncadd (%p871_p13), %s203_s7, 4294967168  ;;  %p229_p7 = scmp.eq.s32.totalorder %s619_s15, 0 }
  0x51   : > { %vm235_vm0 = vcmask (%p229_p7), 0   ;;  %v631_v0 = vmov (%p229_p7), 0.0  }
  0x52   : > { %234 = sbr.rel (!%p229_p7) target bundleno = 89 (0x59), region = 44  ;;  %236 = vst.msk [vmem:[#allocation8] sm:$0x1] (%p229_p7), %vm235_vm0, %v631_v0 }
  0x59 PF: > { %v242_v1 = vld [vmem:[%s197_s5] sm:$0xff]  ;;  %v243_v2 = vld [vmem:[%s206_s20] sm:$0xff]  ;;  %v278_v3 = vlaneseq  ;;  %v280_v5 = vstv %s619_s15  ;;  %vm283_vm1 = vcmask 1024   ;;  %vm240_vm3 = vcmask 0   ;;  %s633_s10 = smov [#allocation8]   ;;  %p814_p9 = scmp.eq.s32.totalorder %s392_s18, 1 }
  0x5a   : > { %v244_v4 = vsub.f32 %v242_v1, %v243_v2  ;;  %v277_v6 = vld [vmem:[%s859_s0] sm:$0x3]  ;;  %v632_v11 = vmov 0.0   ;;  %v294_v45 = vld [vmem:[#allocation8] sm:$0x1]  ;;  %s308_s12 = sshll.u32 %s633_s10, 4  ;;  %s309_s12 = int_to_ptr.vmem [resolvable:$true] %s308_s12 }
  0x5b   : > { %v279_v7 = vshrl.u32 %v278_v3, 7  ;;  %241 = vst.msk [vmem:[#allocation2] sm:$0x1] %vm240_vm3, %v632_v11  ;;  %s543_s26 = scalar_lea.vmem %s309_s12, 16  ;;  %s549_s21 = scalar_lea.vmem %s309_s12, 32 }
  0x5c   : > { %v246_v8 = vmul.f32 %v244_v4, %v244_v4  ;;  %p544_p6 = scmp.ne.s32.totalorder %s309_s12, %s543_s26  ;;  %p550_p4 = scmp.lt.s32.totalorder %s309_s12, %s309_s12 }
  0x5d   : > { %vm281_vm2 = vcmp.eq.s32.totalorder %v279_v7, %v280_v5  ;;  %p551_p1 = scmp.lt.s32.totalorder %s549_s21, %s543_s26 }
  0x5e   : > { %247 = vadd.xlane.f32.xlu0 %v246_v8  ;;  %v282_v9 = vsel %vm281_vm2, %v277_v6, 0.0  ;;  %p545_p2 = pnand %p544_p6, %p814_p9 }
  0x5f   : > { %v284_v10 = vsel %vm283_vm1, %v282_v9, 0.0  ;;  %p552_p5 = por %p551_p1, %p550_p4 }
  0x60   : > { %p546_p3 = pneg %p545_p2 }
  0x62   : > { %285 = vadd.xlane.f32.xlu0 %v284_v10  ;;  %v245_v26 = vld [vmem:[#allocation2] sm:$0x1]  ;;  %p553_p10 = pnand %p552_p5, %p546_p3 }
  0xeb   : > { %v248_v12 = vpop.xlane.xlu0 %247 }
  0xec   : > { %v249_v13 = vrot.slane %v248_v12, 4 }
  0xee   : > { %v250_v14 = vadd.f32 %v249_v13, %v248_v12 }
  0xef   : > { %v286_v15 = vpop.xlane.xlu0 %285 }
  0xf0   : > { %v251_v16 = vrot.slane %v250_v14, 2  ;;  %v287_v17 = vrot.slane %v286_v15, 4 }
  0xf2   : > { %v252_v18 = vadd.f32 %v251_v16, %v250_v14  ;;  %v288_v19 = vadd.f32 %v287_v17, %v286_v15 }
  0xf4   : > { %v253_v20 = vrot.slane %v252_v18, 1  ;;  %v289_v21 = vrot.slane %v288_v19, 2 }
  0xf6   : > { %v254_v22 = vadd.f32 %v253_v20, %v252_v18  ;;  %v290_v23 = vadd.f32 %v289_v21, %v288_v19 }
  0xf8   : > { %408 = vpush %v254_v22  ;;  %v291_v24 = vrot.slane %v290_v23, 1 }
  0xfa   : > { %v292_v25 = vadd.f32 %v291_v24, %v290_v23 }
  0xfc   : > { %410 = vpush %v292_v25 }
 0x129   : > { %s409_s15 = spop %408 }
 0x12a   : > { %v256_v27 = vstv %s409_s15 }
 0x12b   : > { %v257_v28 = vadd.f32 %v256_v27, %v245_v26 }
 0x12d   : > { %259 = vst.msk [vmem:[#allocation2] sm:$0x1] %vm240_vm3, %v257_v28  ;;  %s411_s23 = spop %410 }
 0x12e   : > { %v295_v42 = vstv %s411_s23 }
 0x134   : > { %v263_v29 = vld [vmem:[#allocation2] sm:$0x1] }
 0x135   : > { %v264_v30 = vmul.f32 0.0009765625, %v263_v29 }
 0x137   : > { %v265_v31 = vmax.f32 %v264_v30, 1e-08 }
 0x139   : > { %v266_v32 = vmin.f32 %v265_v31, 100.0 }
 0x13b   : > { %v267_v33 = vadd.f32 1.0, %v266_v32  ;;  %v270_v34 = vmul.f32 -0.5, %v266_v32  ;;  %v273_v36 = vand.u32 2147483647, %v266_v32 }
 0x13d   : > { %481 = vlog2.f32 %v267_v33  ;;  %v271_v35 = vadd.f32 1.0, %v270_v34  ;;  %vm274_vm4 = vcmp.lt.f32.partialorder %v273_v36, 0.0004427343 }
 0x13f   : > { %v272_v39 = vmul.f32 %v271_v35, %v266_v32 }
 0x147   : > { %v482_v37 = vpop.eup %481 }
 0x148   : > { %v269_v38 = vmul.f32 0.6931472, %v482_v37 }
 0x14a   : > { %v275_v40 = vsel %vm274_vm4, %v272_v39, %v269_v38 }
 0x14b   : > { %v276_v41 = vmul.f32 %v275_v40, %v275_v40 }
 0x14d   : > { %v296_v43 = vmul.f32 %v295_v42, %v276_v41 }
 0x14f   : > { %v297_v44 = vmul.f32 %v296_v43, %v264_v30 }
 0x151   : > { %v298_v46 = vmul.f32 0.5, %v297_v44 }
 0x153   : > { %v299_v47 = vadd.f32 %v298_v46, %v294_v45 }
 0x155   : > { %300 = vst.msk [vmem:[#allocation8] sm:$0x1] %vm240_vm3, %v299_v47 }
 0x156   : > { %556 = shalt.err (!%p553_p10)
}
 0x157   : > { %s557_s25 = scalar_lea.hbm %s862_s3, 16 }
 0x158   : > { %p558_p11 = scmp.ne.s32.totalorder %s862_s3, %s557_s25  ;;  %p563_p8 = scmp.lt.u32.totalorder %s557_s25, %s862_s3 }
 0x15a   : > { %p559_p0 = pnand %p558_p11, %p814_p9 }
 0x15c   : > { %p560_p12 = pneg %p559_p0 }
 0x15e   : > { %p565_p13 = pnand %p563_p8, %p560_p12 }
 0x160   : > { %568 = shalt.err (!%p565_p13)
}
 0x161   : > { %417 = dma.vmem_to_hbm [thread:$0]  (%p814_p9), %s309_s12, 16, %s862_s3, [#allocation5]  }
 0x162   : > { %602 = dma.done.wait (%p814_p9), [#allocation5], 16  }
 0x163   : > { %604 = vsyncadd (%p814_p9), [#allocation5], 4294967280 }
 0x164 PF: > { %s20_s17 = sadd.s32 1, %s627_s17   ;;  %s873_s12 = smov %s611_s13 }
 0x165   : > { %p17_p7 = scmp.ge.s32.totalorder %s20_s17, 4   ;;  %s874_s13 = smov %s615_s14 }
 0x166   : > { %s875_s14 = smov %s705_s24  ;;  %s876_s15 = smov %s623_s16 }
 0x167   : > { %s877_s16 = smov %s879_s19  ;;  %19 = sbr.rel (!%p17_p7) target bundleno = 7 (0x7), region = 94 }
 0x16e   :  { %321 = vsyncpa [#allocation4], 1 }
 0x16f   :  { %323 = vsyncpa [#allocation4 + $0x1], 1 }
 0x170   :  { %324 = vsyncpa [#allocation7], 1 }
 0x171   :  { %326 = vsyncpa [#allocation7 + $0x1], 1 }
 0x172   :  { %327 = vsyncpa [#allocation5], 1 }
 0x173   :  { %329 = vsyncpa [#allocation5 + $0x1], 1 }

</bundles_post_ra>
